<compile_context>
chip_gen: v7x
topology: tpu7x:2x2x1
jax: 0.10.0
libtpu: 0.0.40
codegen_flags: <defaults>
</compile_context>

<pallas_src>
import math

import jax
import jax.numpy as jnp
from jax.experimental import pallas as pl
from jax.experimental.pallas import tpu as pltpu


def _vmem_capacity_bytes():
    """Physical VMEM per TensorCore; conservative fallback if the query fails."""
    try:
        return int(pltpu.get_tpu_info().vmem_capacity_bytes)
    except Exception:
        return 64 * 1024 * 1024  # v7x-sized (smallest of v5e/v6e/v7x)


def _pick_seq_tile(L, max_tile):
    """Largest t <= max_tile with t | L and t % 8 == 0; fall back to full L."""
    if L <= max_tile:
        return L
    t = (max_tile // 8) * 8
    while t >= 8:
        if L % t == 0:
            return t
        t -= 8
    return L


def maxpool_classifier_kernel(x_ref, w_ref, b_ref, o_ref, acc_ref):
    # x_ref: (tB, tL, D) VMEM (streamed)     w_ref: (1, D) VMEM (resident)
    # b_ref: (1, 1) SMEM                     o_ref: (tB, 1) VMEM (resident over L axis)
    # acc_ref: (tB, D) f32 VMEM scratch -- running max over the sequence axis.
    k = pl.program_id(1)

    @pl.when(k == 0)
    def _init():
        # -inf init is mandatory for correctness with all-negative inputs.
        acc_ref[...] = jnp.full(acc_ref.shape, -jnp.inf, dtype=acc_ref.dtype)

    # Running elementwise max == AdaptiveMaxPool1d(1) over the (tiled) L axis.
    # Accumulate in f32 (also covers bf16 inputs, incl. v5e which has no bf16 VPU).
    tile_max = jnp.max(x_ref[...].astype(jnp.float32), axis=1)      # (tB, D)
    acc_ref[...] = jnp.maximum(acc_ref[...], tile_max)

    # Finalize once per batch tile: Dropout(p=0) is identity; Linear(D, 1) is a
    # VPU multiply + lane reduce (avoids a 1-column MXU matmul and an XLU w.T).
    # TODO(synk): stochastic dropout (p>0, train mode) not implemented; module default is p=0.
    @pl.when(k == pl.num_programs(1) - 1)
    def _finalize():
        pooled = acc_ref[...]                                       # (tB, D) f32
        w = w_ref[...].astype(jnp.float32)                          # (1, D)
        out = jnp.sum(pooled * w, axis=-1, keepdims=True)           # (tB, 1)
        out = out + b_ref[0, 0]                                     # scalar bias from SMEM
        o_ref[...] = out.astype(o_ref.dtype)


def maxpool_classifier(x, w, b, *, max_seq_tile=None):
    """x: (B, L, D), w: (1, D), b: (1, 1) -> (B, 1)."""
    B, L, D = x.shape
    itemsize = jnp.dtype(x.dtype).itemsize

    # ---- Tile sizing: biggest double-buffered x tile that fits scoped VMEM. ----
    vmem_cap = _vmem_capacity_bytes()
    vmem_limit = (vmem_cap * 3) // 4              # leave headroom for the compiler
    x_block_budget = vmem_limit // 3              # 2 x-buffers <= 2/3 of the limit

    # Batch tile: must be a multiple of 8 (output sublane dim) or the full batch.
    tB = 8 if (B > 8 and B % 8 == 0) else B

    max_tl = max(8, x_block_budget // max(1, tB * D * itemsize))
    cap = 4096 if max_seq_tile is None else max_seq_tile
    tL = _pick_seq_tile(L, min(max_tl, cap))

    grid = (B // tB, L // tL)

    cost = pl.CostEstimate(
        flops=2 * B * D,
        transcendentals=0,
        bytes_accessed=B * L * D * itemsize + D * itemsize + B * itemsize,
    )

    return pl.pallas_call(
        maxpool_classifier_kernel,
        out_shape=jax.ShapeDtypeStruct((B, 1), x.dtype),
        grid_spec=pltpu.PrefetchScalarGridSpec(
            num_scalar_prefetch=0,
            grid=grid,
            in_specs=[
                pl.BlockSpec((tB, tL, D), lambda i, k: (i, k, 0)),   # streamed x tiles
                pl.BlockSpec((1, D), lambda i, k: (0, 0)),           # resident weights
                pl.BlockSpec(memory_space=pltpu.MemorySpace.SMEM),   # bias scalar in SMEM
            ],
            out_specs=pl.BlockSpec((tB, 1), lambda i, k: (i, 0)),    # resident over L axis
            scratch_shapes=[pltpu.VMEM((tB, D), jnp.float32)],       # running-max accumulator
        ),
        compiler_params=pltpu.CompilerParams(
            dimension_semantics=("parallel", "arbitrary"),
            vmem_limit_bytes=vmem_limit,
        ),
        cost_estimate=cost,
    )(x, w, b)


def _reference(x, w, b):
    return jnp.max(x, axis=1) @ w.T + b


if __name__ == "__main__":
    # Small shapes consistent with the module: batch=2, seq=8, dim=32.
    B, L, D = 2, 8, 32

    key = jax.random.PRNGKey(0)
    kx, kw, kb = jax.random.split(key, 3)

    x = jax.random.normal(kx, (B, L, D), dtype=jnp.float32)
    # Deterministic Linear(D, 1) init, matching PyTorch's U(-1/sqrt(D), 1/sqrt(D)).
    bound = 1.0 / math.sqrt(D)
    w = jax.random.uniform(kw, (1, D), dtype=jnp.float32, minval=-bound, maxval=bound)
    b = jax.random.uniform(kb, (1, 1), dtype=jnp.float32, minval=-bound, maxval=bound)

    out = jax.block_until_ready(maxpool_classifier(x, w, b))
    ref = _reference(x, w, b)
    assert out.shape == (B, 1)
    assert jnp.allclose(out, ref, atol=1e-5, rtol=1e-5), (out, ref)

    # Second check exercising the real multi-tile grid path (accumulator across L,
    # multiple batch tiles): grid = (2, 4).
    B2, L2, D2 = 16, 256, 128
    k2x, k2w, k2b = jax.random.split(jax.random.PRNGKey(1), 3)
    x2 = jax.random.normal(k2x, (B2, L2, D2), dtype=jnp.float32)
    bound2 = 1.0 / math.sqrt(D2)
    w2 = jax.random.uniform(k2w, (1, D2), dtype=jnp.float32, minval=-bound2, maxval=bound2)
    b2 = jax.random.uniform(k2b, (1, 1), dtype=jnp.float32, minval=-bound2, maxval=bound2)

    out2 = jax.block_until_ready(maxpool_classifier(x2, w2, b2, max_seq_tile=64))
    ref2 = _reference(x2, w2, b2)
    assert out2.shape == (B2, 1)
    assert jnp.allclose(out2, ref2, atol=1e-4, rtol=1e-5), (out2, ref2)

    print("KERNEL_OK")
</pallas_src>

<mosaic_0001>
module attributes {stable_mosaic.version = 11 : i64} {
  func.func @maxpool_classifier_kernel(%arg0: i32, %arg1: i32, %arg2: memref<2x8x32xf32, #tpu.memory_space<vmem>>, %arg3: memref<1x32xf32, #tpu.memory_space<vmem>>, %arg4: memref<1x1xf32, #tpu.memory_space<smem>>, %arg5: memref<2x1xf32, #tpu.memory_space<vmem>>, %arg6: memref<2x32xf32, #tpu.memory_space<vmem>>) attributes {dimension_semantics = [#tpu.dimension_semantics<parallel>, #tpu.dimension_semantics<arbitrary>], iteration_bounds = array<i64: 1, 1>, scalar_prefetch = 0 : i64, scratch_operands = 1 : i64, tpu.core_type = #tpu.core_type<tc>, window_params = [{transform_indices = @transform_0, window_bounds = array<i64: 2, 8, 32>}, {pipeline_mode = #tpu.pipeline_mode<synchronous>, transform_indices = @transform_1, window_bounds = array<i64: 1, 32>}, {transform_indices = @transform_2, window_bounds = array<i64: 1, 1>}, {transform_indices = @transform_3, window_bounds = array<i64: 2, 1>}]} {
    %c0_i32 = arith.constant 0 : i32
    %0 = arith.cmpi eq, %arg1, %c0_i32 : i32
    %1 = arith.extui %0 : i1 to i32
    %c0_i32_0 = arith.constant 0 : i32
    %2 = arith.cmpi ne, %1, %c0_i32_0 : i32
    scf.if %2 {
      %cst_9 = arith.constant 0xFF800000 : f32
      %11 = vector.broadcast %cst_9 : f32 to vector<2x32xf32>
      %c0_10 = arith.constant 0 : index
      %c0_11 = arith.constant 0 : index
      %12 = vector.load %arg6[%c0_10, %c0_11] : memref<2x32xf32, #tpu.memory_space<vmem>>, vector<2x32xf32>
      tpu.vector_store %arg6[%c0_10, %c0_11], %11 {strides = array<i32>} : memref<2x32xf32, #tpu.memory_space<vmem>>, vector<2x32xf32>,
    } else {
    }
    %c0 = arith.constant 0 : index
    %c0_1 = arith.constant 0 : index
    %c0_2 = arith.constant 0 : index
    %3 = vector.load %arg2[%c0, %c0_1, %c0_2] : memref<2x8x32xf32, #tpu.memory_space<vmem>>, vector<2x8x32xf32>
    %cst = arith.constant dense<0xFF800000> : vector<2x32xf32>
    %4 = vector.multi_reduction <maximumf>, %3, %cst [1] : vector<2x8x32xf32> to vector<2x32xf32>
    %c0_3 = arith.constant 0 : index
    %c0_4 = arith.constant 0 : index
    %5 = vector.load %arg6[%c0_3, %c0_4] : memref<2x32xf32, #tpu.memory_space<vmem>>, vector<2x32xf32>
    %6 = arith.maximumf %5, %4 : vector<2x32xf32>
    %c0_5 = arith.constant 0 : index
    %c0_6 = arith.constant 0 : index
    %7 = vector.load %arg6[%c0_5, %c0_6] : memref<2x32xf32, #tpu.memory_space<vmem>>, vector<2x32xf32>
    tpu.vector_store %arg6[%c0_5, %c0_6], %6 {strides = array<i32>} : memref<2x32xf32, #tpu.memory_space<vmem>>, vector<2x32xf32>,
    %c0_i32_7 = arith.constant 0 : i32
    %8 = arith.cmpi eq, %arg1, %c0_i32_7 : i32
    %9 = arith.extui %8 : i1 to i32
    %c0_i32_8 = arith.constant 0 : i32
    %10 = arith.cmpi ne, %9, %c0_i32_8 : i32
    scf.if %10 {
      %c0_9 = arith.constant 0 : index
      %c0_10 = arith.constant 0 : index
      %11 = vector.load %arg6[%c0_9, %c0_10] : memref<2x32xf32, #tpu.memory_space<vmem>>, vector<2x32xf32>
      %c0_11 = arith.constant 0 : index
      %c0_12 = arith.constant 0 : index
      %12 = vector.load %arg3[%c0_11, %c0_12] : memref<1x32xf32, #tpu.memory_space<vmem>>, vector<1x32xf32>
      %13 = vector.broadcast %12 : vector<1x32xf32> to vector<2x32xf32>
      %14 = arith.mulf %11, %13 : vector<2x32xf32>
      %cst_13 = arith.constant dense<0.000000e+00> : vector<2xf32>
      %15 = vector.multi_reduction <add>, %14, %cst_13 [1] : vector<2x32xf32> to vector<2xf32>
      %16 = vector.shape_cast %15 : vector<2xf32> to vector<2x1xf32>
      %c0_14 = arith.constant 0 : index
      %c0_15 = arith.constant 0 : index
      %17 = memref.load %arg4[%c0_14, %c0_15] : memref<1x1xf32, #tpu.memory_space<smem>>
      %18 = vector.broadcast %17 : f32 to vector<2x1xf32>
      %19 = arith.addf %16, %18 : vector<2x1xf32>
      %c0_16 = arith.constant 0 : index
      %c0_17 = arith.constant 0 : index
      %20 = vector.load %arg5[%c0_16, %c0_17] : memref<2x1xf32, #tpu.memory_space<vmem>>, vector<2x1xf32>
      tpu.vector_store %arg5[%c0_16, %c0_17], %19 {strides = array<i32>} : memref<2x1xf32, #tpu.memory_space<vmem>>, vector<2x1xf32>,
    } else {
    }
    return
  }
  func.func @transform_0(%arg0: i32, %arg1: i32) -> (i32, i32, i32) {
    %c0_i32 = arith.constant 0 : i32
    %c0_i32_0 = arith.constant 0 : i32
    return %arg0, %arg1, %c0_i32 : i32, i32, i32
  }
  func.func @transform_1(%arg0: i32, %arg1: i32) -> (i32, i32) {
    %c0_i32 = arith.constant 0 : i32
    %c0_i32_0 = arith.constant 0 : i32
    %c0_i32_1 = arith.constant 0 : i32
    return %c0_i32, %c0_i32_0 : i32, i32
  }
  func.func @transform_2(%arg0: i32, %arg1: i32) -> (i32, i32) {
    %c0_i32 = arith.constant 0 : i32
    %c0_i32_0 = arith.constant 0 : i32
    %c0_i32_1 = arith.constant 0 : i32
    return %c0_i32, %c0_i32_0 : i32, i32
  }
  func.func @transform_3(%arg0: i32, %arg1: i32) -> (i32, i32) {
    %c0_i32 = arith.constant 0 : i32
    %c0_i32_0 = arith.constant 0 : i32
    return %arg0, %c0_i32 : i32, i32
  }
}

</mosaic_0001>

<bundles_post_ra>
// kernel: tpu_custom_call.1
= control target key start
LH: loop header
LB: loop body
LE: loop exit
PB: predicated region body
PF: predicated region fallthrough
CT: control target
= control target key end

     0   :  { %9 = vsyncpa [#allocation5], 0  ;;  %s115_s12 = smov [#allocation4]   ;;  %s163_s0 = inlined_call_operand.hbm [shape: f32[2,8,32], index: 0, kind: input, shape index: {}]   ;;  %s164_s1 = inlined_call_operand.vmem [shape: f32[1,32], index: 1, kind: input, shape index: {}]   ;;  %s165_s2 = inlined_call_operand.<no memory space> [shape: f32[1,1], index: 2, kind: input, shape index: {}]   ;;  %s166_s3 = inlined_call_operand.vmem [shape: f32[2,1], index: 3, kind: output, shape index: {}]  }
   0x1   :  { %s15_s13 = sshll.u32 %s115_s12, 4  ;;  %s91_s16 = scalar_lea.hbm %s163_s0, 256  ;;  %s16_s13 = int_to_ptr.vmem [resolvable:$true] %s15_s13 }
   0x2   :  { %p92_p0 = scmp.ne.s32.totalorder %s163_s0, %s91_s16  ;;  %p95_p1 = scmp.lt.u32.totalorder %s91_s16, %s163_s0 }
   0x4   :  { %p97_p2 = pnand %p95_p1, %p92_p0 }
   0x6   :  { %100 = shalt.err (!%p97_p2)
}
   0x7   :  { %s101_s21 = scalar_lea.vmem %s16_s13, 256  ;;  %p106_p4 = scmp.lt.s32.totalorder %s16_s13, %s16_s13 }
   0x8   :  { %p102_p3 = scmp.ne.s32.totalorder %s16_s13, %s101_s21  ;;  %p107_p5 = scmp.lt.s32.totalorder %s101_s21, %s101_s21 }
   0xa   :  { %p108_p6 = por %p107_p5, %p106_p4 }
   0xc   :  { %p109_p7 = pnand %p108_p6, %p102_p3 }
   0xe   :  { %112 = shalt.err (!%p109_p7)
}
   0xf   :  { %s116_s22 = smov 128   ;;  %s117_s23 = smov 8  }
  0x10   :  { %21 = dma.hbm_to_vmem [thread:$0]  %s163_s0, 256, %s16_s13, [#allocation5], %s116_s22, %s116_s22, %s117_s23  }
  0x11   :  { %113 = dma.done.wait [#allocation5], 256  }
  0x12   :  { %114 = vsyncadd [#allocation5], 4294967040  ;;  %vm33_vm0 = vcmask 254976   ;;  %v118_v0 = vmov -inf   ;;  %vm37_vm1 = vcmask 261120   ;;  %v35_v1 = vld [vmem:[#allocation4] sm:$0xff]  ;;  %v77_v24 = vstv %s165_s2 }
  0x13   :  { %34 = vst.msk [vmem:[#allocation2] sm:$0x3] %vm33_vm0, %v118_v0  ;;  %v36_v2 = vld [vmem:[#allocation4 + $0x8] sm:$0xff]  ;;  %v38_v3 = vsel %vm37_vm1, %v35_v1, -inf  ;;  %vm55_vm2 = vcmask 1041409   ;;  %vm79_vm3 = vcmask 1024  }
  0x14   :  { %v45_v4 = vsel %vm37_vm1, %v36_v2, -inf  ;;  %v39_v5 = vrot.slane %v38_v3, 4  ;;  %v86_v20 = vld [vmem:[%s164_s1] ss:$0 sm:$0xff] }
  0x15   :  { %v46_v6 = vrot.slane %v45_v4, 4 }
  0x16   :  { %v40_v7 = vmax.f32 %v38_v3, %v39_v5 }
  0x17   :  { %v47_v8 = vmax.f32 %v45_v4, %v46_v6 }
  0x18   :  { %v41_v9 = vrot.slane %v40_v7, 2 }
  0x19   :  { %v48_v10 = vrot.slane %v47_v8, 2 }
  0x1a   :  { %v42_v11 = vmax.f32 %v40_v7, %v41_v9  ;;  %v52_v17 = vld [vmem:[#allocation2] sm:$0x3] }
  0x1b   :  { %v49_v12 = vmax.f32 %v47_v8, %v48_v10 }
  0x1c   :  { %v43_v13 = vrot.slane %v42_v11, 1 }
  0x1d   :  { %v50_v14 = vrot.slane %v49_v12, 1 }
  0x1e   :  { %v44_v15 = vmax.f32 %v42_v11, %v43_v13 }
  0x1f   :  { %v51_v16 = vmax.f32 %v49_v12, %v50_v14 }
  0x21   :  { %v56_v18 = vsel %vm55_vm2, %v51_v16, %v44_v15 }
  0x22   :  { %v58_v19 = vmax.f32 %v52_v17, %v56_v18 }
  0x24   :  { %60 = vst.msk [vmem:[#allocation2] sm:$0x3] %vm33_vm0, %v58_v19 }
  0x2b   :  { %v64_v21 = vld [vmem:[#allocation2] sm:$0x3] }
  0x2c   :  { %v72_v22 = vmul.f32 %v86_v20, %v64_v21 }
  0x2e   :  { %v73_v23 = vsel %vm33_vm0, %v72_v22, 0.0 }
  0x2f   :  { %74 = vadd.xlane.f32.xlu0 %v73_v23 }
  0xbc   :  { %v75_v25 = vpop.xlane.xlu0 %74 }
  0xbd   :  { %v78_v26 = vadd.f32 %v77_v24, %v75_v25 }
  0xbf   :  { %80 = vst.msk [vmem:[%s166_s3] sm:$0x3] %vm79_vm3, %v78_v26 }
  0xc0   :  { %85 = vsyncpa [#allocation5], 1 }

</bundles_post_ra>
